<compile_context>
chip_gen: v5e
topology: v5e:2x2
jax: 0.10.0
libtpu: 0.0.40
codegen_flags: <defaults>
</compile_context>

<pallas_src>
import functools
import math

import jax
import jax.numpy as jnp
from jax.experimental import pallas as pl
from jax.experimental.pallas import tpu as pltpu

_C1 = math.sqrt(2.0 / math.pi)          # sqrt(2/pi)
_C2 = 0.044715 * _C1                    # 0.044715 * sqrt(2/pi)
_LANES = 128


def _gelu_tanh_math(x, compute_dtype):
    """Factored tanh-approx GELU in `compute_dtype` (python-float consts stay weak)."""
    xc = x.astype(compute_dtype)
    inner = xc * (_C1 + _C2 * (xc * xc))
    return xc * (0.5 + 0.5 * jnp.tanh(inner))


def _gelu_tanh_kernel(x_ref, o_ref, *, compute_dtype):
    # tanh goes to the EUP slot; everything else is a handful of VALU ops,
    # so the kernel stays HBM-bound in both the f32 and bf16 regimes.
    y = _gelu_tanh_math(x_ref[...], compute_dtype)
    o_ref[...] = y.astype(o_ref.dtype)


def _is_v5_chip() -> bool:
    try:
        kind = jax.devices()[0].device_kind.lower()
    except Exception:
        return False
    return "v5" in kind


def _run_2d(x2d, compute_dtype, row_tile):
    """Run the kernel on a lane-dense (n_rows, 128) slab."""
    n_rows = x2d.shape[0]
    itemsize = jnp.dtype(x2d.dtype).itemsize
    # Native sublane tile: (8,128) f32, (16,128) bf16/f16, (32,128) int8/fp8.
    sub = {1: 32, 2: 16}.get(itemsize, 8)

    # ~2 MiB per operand block by default (v5e-safe, ~roofline on all gens).
    if row_tile is None:
        row_tile = (2 * 1024 * 1024) // (_LANES * itemsize)
    row_tile = max(sub, (row_tile // sub) * sub)

    if n_rows <= sub:
        tile_rows = n_rows                      # block == full array dims (tiny input)
    else:
        target_steps = 8                        # keep the pipeline fed + feed both v7x TCs
        chunk = pl.cdiv(n_rows, target_steps)
        chunk = -(-chunk // sub) * sub          # sublane-align (round up)
        tile_rows = max(sub, min(row_tile, chunk))
    grid = (pl.cdiv(n_rows, tile_rows),)        # trailing partial block is masked by Pallas

    kernel = functools.partial(_gelu_tanh_kernel, compute_dtype=compute_dtype)

    def run(sem):
        return pl.pallas_call(
            kernel,
            out_shape=jax.ShapeDtypeStruct((n_rows, _LANES), x2d.dtype),
            grid_spec=pltpu.PrefetchScalarGridSpec(
                num_scalar_prefetch=0,
                grid=grid,
                in_specs=[pl.BlockSpec((tile_rows, _LANES), lambda i: (i, 0))],
                out_specs=pl.BlockSpec((tile_rows, _LANES), lambda i: (i, 0)),
            ),
            compiler_params=pltpu.CompilerParams(dimension_semantics=(sem,)),
        )(x2d)

    core_parallel = getattr(pltpu, "CORE_PARALLEL", None)
    if core_parallel is not None:
        try:
            return run(core_parallel)           # shards the row grid across TCs on v7x
        except Exception:
            pass                                # older/other backends: plain parallel
    return run(pltpu.PARALLEL)


def gelu_tanh(x: jax.Array, *, row_tile: int | None = None,
              compute_dtype=None) -> jax.Array:
    """Elementwise tanh-approx GELU (matches torch gelu(approximate='tanh'))."""
    orig_shape = x.shape
    orig_dtype = x.dtype
    total = x.size
    if total == 0:
        return x

    if compute_dtype is None:
        # bf16 compute on bf16 inputs where the VPU/EUP support it (v6e/v7x);
        # f32 everywhere else (and on v5-gen chips).
        if orig_dtype == jnp.bfloat16 and not _is_v5_chip():
            compute_dtype = jnp.bfloat16
        else:
            compute_dtype = jnp.float32

    x_flat = jnp.reshape(x, (-1,))              # free view
    rem = total % _LANES
    aligned = total - rem

    if aligned == 0:
        # Entire input is smaller than one lane row: plain jnp, no kernel launch.
        out_flat = _gelu_tanh_math(x_flat, compute_dtype).astype(orig_dtype)
        return jnp.reshape(out_flat, orig_shape)

    head = x_flat if rem == 0 else jax.lax.slice(x_flat, (0,), (aligned,))
    x2d = jnp.reshape(head, (aligned // _LANES, _LANES))
    out_head = jnp.reshape(_run_2d(x2d, compute_dtype, row_tile), (-1,))

    if rem:
        tail = jax.lax.slice(x_flat, (aligned,), (total,))
        out_tail = _gelu_tanh_math(tail, compute_dtype).astype(orig_dtype)
        out_flat = jnp.concatenate([out_head, out_tail])
    else:
        out_flat = out_head
    return jnp.reshape(out_flat, orig_shape)


def _ref_gelu_tanh_f32(x):
    xf = x.astype(jnp.float32)
    return 0.5 * xf * (1.0 + jnp.tanh(_C1 * (xf + 0.044715 * xf ** 3)))


if __name__ == "__main__":
    key = jax.random.PRNGKey(0)

    # Small NCHW-like input consistent with the module's usage.
    x = jax.random.normal(key, (2, 4, 16, 16), dtype=jnp.float32)
    y = jax.block_until_ready(gelu_tanh(x))
    assert y.shape == x.shape and y.dtype == x.dtype
    assert jnp.max(jnp.abs(y - _ref_gelu_tanh_f32(x))) < 1e-5

    # Ragged case: element count not a multiple of 128 (pure-tail path).
    x2 = jax.random.normal(jax.random.PRNGKey(1), (3, 5, 7), dtype=jnp.float32)
    y2 = jax.block_until_ready(gelu_tanh(x2))
    assert y2.shape == x2.shape and y2.dtype == x2.dtype
    assert jnp.max(jnp.abs(y2 - _ref_gelu_tanh_f32(x2))) < 1e-5

    # Ragged case with an aligned prefix (kernel on prefix + jnp tail).
    x3 = jax.random.normal(jax.random.PRNGKey(2), (3, 67), dtype=jnp.float32)
    y3 = jax.block_until_ready(gelu_tanh(x3))
    assert y3.shape == x3.shape and y3.dtype == x3.dtype
    assert jnp.max(jnp.abs(y3 - _ref_gelu_tanh_f32(x3))) < 1e-5

    # bf16 input (bf16 compute on v6e/v7x, f32 compute on v5-gen chips).
    x4 = jax.random.normal(jax.random.PRNGKey(3), (2, 8, 32), dtype=jnp.bfloat16)
    y4 = jax.block_until_ready(gelu_tanh(x4))
    assert y4.shape == x4.shape and y4.dtype == x4.dtype
    ref4 = _ref_gelu_tanh_f32(x4).astype(jnp.bfloat16)
    assert jnp.max(jnp.abs(y4.astype(jnp.float32) - ref4.astype(jnp.float32))) < 5e-2

    print("KERNEL_OK")
</pallas_src>

<mosaic_0001>
module attributes {stable_mosaic.version = 11 : i64} {
  func.func @_gelu_tanh_kernel(%arg0: i32, %arg1: memref<8x128xf32, #tpu.memory_space<vmem>>, %arg2: memref<8x128xf32, #tpu.memory_space<vmem>>) attributes {dimension_semantics = [#tpu.dimension_semantics<core_parallel>], iteration_bounds = array<i64: 2>, scalar_prefetch = 0 : i64, scratch_operands = 0 : i64, tpu.core_type = #tpu.core_type<tc>, window_params = [{transform_indices = @transform_0, window_bounds = array<i64: 8, 128>}, {transform_indices = @transform_1, window_bounds = array<i64: 8, 128>}]} {
    %c0 = arith.constant 0 : index
    %c0_0 = arith.constant 0 : index
    %0 = vector.load %arg1[%c0, %c0_0] : memref<8x128xf32, #tpu.memory_space<vmem>>, vector<8x128xf32>
    %1 = arith.mulf %0, %0 : vector<8x128xf32>
    %cst = arith.constant 0.0356774069 : f32
    %2 = vector.broadcast %cst : f32 to vector<8x128xf32>
    %3 = arith.mulf %2, %1 : vector<8x128xf32>
    %cst_1 = arith.constant 0.797884583 : f32
    %4 = vector.broadcast %cst_1 : f32 to vector<8x128xf32>
    %5 = arith.addf %4, %3 : vector<8x128xf32>
    %6 = arith.mulf %0, %5 : vector<8x128xf32>
    %7 = math.tanh %6 : vector<8x128xf32>
    %cst_2 = arith.constant 5.000000e-01 : f32
    %8 = vector.broadcast %cst_2 : f32 to vector<8x128xf32>
    %9 = arith.mulf %8, %7 : vector<8x128xf32>
    %cst_3 = arith.constant 5.000000e-01 : f32
    %10 = vector.broadcast %cst_3 : f32 to vector<8x128xf32>
    %11 = arith.addf %10, %9 : vector<8x128xf32>
    %12 = arith.mulf %0, %11 : vector<8x128xf32>
    %c0_4 = arith.constant 0 : index
    %c0_5 = arith.constant 0 : index
    %13 = vector.load %arg2[%c0_4, %c0_5] : memref<8x128xf32, #tpu.memory_space<vmem>>, vector<8x128xf32>
    tpu.vector_store %arg2[%c0_4, %c0_5], %12 {strides = array<i32>} : memref<8x128xf32, #tpu.memory_space<vmem>>, vector<8x128xf32>,
    return
  }
  func.func @transform_0(%arg0: i32) -> (i32, i32) {
    %c0_i32 = arith.constant 0 : i32
    %c0_i32_0 = arith.constant 0 : i32
    return %arg0, %c0_i32 : i32, i32
  }
  func.func @transform_1(%arg0: i32) -> (i32, i32) {
    %c0_i32 = arith.constant 0 : i32
    %c0_i32_0 = arith.constant 0 : i32
    return %arg0, %c0_i32 : i32, i32
  }
}

module attributes {stable_mosaic.version = 11 : i64} {
  func.func @_gelu_tanh_kernel(%arg0: i32, %arg1: memref<8x128xf32, #tpu.memory_space<vmem>>, %arg2: memref<8x128xf32, #tpu.memory_space<vmem>>) attributes {dimension_semantics = [#tpu.dimension_semantics<parallel>], iteration_bounds = array<i64: 2>, scalar_prefetch = 0 : i64, scratch_operands = 0 : i64, tpu.core_type = #tpu.core_type<tc>, window_params = [{transform_indices = @transform_0, window_bounds = array<i64: 8, 128>}, {transform_indices = @transform_1, window_bounds = array<i64: 8, 128>}]} {
    %c0 = arith.constant 0 : index
    %c0_0 = arith.constant 0 : index
    %0 = vector.load %arg1[%c0, %c0_0] : memref<8x128xf32, #tpu.memory_space<vmem>>, vector<8x128xf32>
    %1 = arith.mulf %0, %0 : vector<8x128xf32>
    %cst = arith.constant 0.0356774069 : f32
    %2 = vector.broadcast %cst : f32 to vector<8x128xf32>
    %3 = arith.mulf %2, %1 : vector<8x128xf32>
    %cst_1 = arith.constant 0.797884583 : f32
    %4 = vector.broadcast %cst_1 : f32 to vector<8x128xf32>
    %5 = arith.addf %4, %3 : vector<8x128xf32>
    %6 = arith.mulf %0, %5 : vector<8x128xf32>
    %7 = math.tanh %6 : vector<8x128xf32>
    %cst_2 = arith.constant 5.000000e-01 : f32
    %8 = vector.broadcast %cst_2 : f32 to vector<8x128xf32>
    %9 = arith.mulf %8, %7 : vector<8x128xf32>
    %cst_3 = arith.constant 5.000000e-01 : f32
    %10 = vector.broadcast %cst_3 : f32 to vector<8x128xf32>
    %11 = arith.addf %10, %9 : vector<8x128xf32>
    %12 = arith.mulf %0, %11 : vector<8x128xf32>
    %c0_4 = arith.constant 0 : index
    %c0_5 = arith.constant 0 : index
    %13 = vector.load %arg2[%c0_4, %c0_5] : memref<8x128xf32, #tpu.memory_space<vmem>>, vector<8x128xf32>
    tpu.vector_store %arg2[%c0_4, %c0_5], %12 {strides = array<i32>} : memref<8x128xf32, #tpu.memory_space<vmem>>, vector<8x128xf32>,
    return
  }
  func.func @transform_0(%arg0: i32) -> (i32, i32) {
    %c0_i32 = arith.constant 0 : i32
    %c0_i32_0 = arith.constant 0 : i32
    return %arg0, %c0_i32 : i32, i32
  }
  func.func @transform_1(%arg0: i32) -> (i32, i32) {
    %c0_i32 = arith.constant 0 : i32
    %c0_i32_0 = arith.constant 0 : i32
    return %arg0, %c0_i32 : i32, i32
  }
}

</mosaic_0001>

<bundles_post_ra>
// kernel: tpu_custom_call.1
= control target key start
LH: loop header
LB: loop body
LE: loop exit
PB: predicated region body
PF: predicated region fallthrough
CT: control target
= control target key end

     0   :  { %6 = vsyncpa [#allocation3], 0  ;;  %s525_s0 = inlined_call_operand.hbm [shape: f32[16,128], index: 0, kind: input, shape index: {}]   ;;  %s526_s1 = inlined_call_operand.hbm [shape: f32[16,128], index: 1, kind: output, shape index: {}]  }
   0x1   :  { %8 = vsyncpa [#allocation3 + $0x1], 0 }
   0x2   :  { %9 = vsyncpa [#allocation4], 0 }
   0x3   :  { %11 = vsyncpa [#allocation4 + $0x1], 0  ;;  %s398_s6 = smov 0   ;;  %s400_s7 = smov 0  }
   0x4   :  { %s402_s8 = smov 0   ;;  %s404_s9 = smov 0  }
   0x5 LB: > { %s419_s10 = sadd.s32 4294967295, %s386_s9   ;;  %s230_s11 = sadd.s32 4294967294, %s386_s9   ;;  %s386_s9 = sphi %s404_s9, %s536_s9   ;;  %s382_s8 = sphi %s402_s8, %s535_s8   ;;  %s378_s7 = sphi %s400_s7, %s534_s7   ;;  %s374_s6 = sphi %s398_s6, %s533_s6  }
   0x6   : > { %s423_s12 = sadd.s32 1, %s386_s9   ;;  %s24_s13 = sadd.s32 1, %s382_s8 }
   0x7   : > { %s21_s14 = ssub.s32 %s386_s9, %s423_s12  ;;  %p31_p0 = scmp.ne.s32.totalorder %s382_s8, %s378_s7 }
   0x8   : > { %p22_p1 = scmp.eq.s32.totalorder %s21_s14, 0  ;;  %p32_p2 = scmp.eq.s32.totalorder %s386_s9, 0 }
   0x9   : > { %p37_p3 = scmp.ne.s32.totalorder %s378_s7, %s374_s6  ;;  %p38_p4 = scmp.eq.s32.totalorder %s419_s10, 0 }
   0xa   : > { %s435_s15 = scalar_select %p22_p1, %s382_s8, %s24_s13  }
   0xb   : > { %p437_p5 = por %p32_p2, %p31_p0  ;;  %p441_p6 = por %p38_p4, %p37_p3 }
   0xc   : > { %p61_p7 = scmp.eq.s32.totalorder %s419_s10, 1  ;;  %p67_p8 = scmp.eq.s32.totalorder %s230_s11, 1 }
   0xd   : > { %p254_p10 = scmp.lt.s32.totalorder %s386_s9, 2  ;;  %s87_s20 = sand.u32 1, %s382_s8  }
   0xe   : > { %p448_p11 = por %p61_p7, %p31_p0  ;;  %p452_p12 = por %p67_p8, %p37_p3 }
   0xf   : > { %s234_s21 = sshll.u32 %s386_s9, 3  ;;  %s233_s22 = sshll.u32 %s87_s20, 3 }
  0x10   : > { %s95_s25 = scalar_lea.hbm %s525_s0, %s234_s21  ;;  %s91_s27 = scalar_lea.vmem [#allocation2], %s233_s22 }
  0x11   : > { %s97_s26 = sshll.u32 %s95_s25, 4  ;;  %s99_s28 = sshll.u32 %s91_s27, 4  ;;  %s98_s26 = int_to_ptr.hbm [resolvable:$true] %s97_s26  ;;  %s100_s28 = int_to_ptr.vmem [resolvable:$true] %s99_s28 }
  0x12   : > { %p463_p13 = pnand %p254_p10, %p437_p5  ;;  %p235_p0 = scmp.ge.s32.totalorder %s386_s9, 1 }
  0x13   : > { %p104_p1 = scmp.lt.s32.totalorder %s386_s9, 3  ;;  %s88_s30 = scalar_lea.sflag [#allocation3], %s87_s20 }
  0x14   : > { %s290_s2 = sshra.s32 %s98_s26, 4  ;;  %p294_p3 = pneg %p463_p13  ;;  %s291_s2 = int_to_ptr.hbm [resolvable:$true] %s290_s2 }
  0x15   : > { %s292_s3 = scalar_lea.hbm %s291_s2, 8  ;;  %s297_s11 = scalar_lea.hbm %s525_s0, 16 }
  0x16   : > { %p293_p2 = scmp.ne.s32.totalorder %s291_s2, %s292_s3  ;;  %p298_p5 = scmp.lt.s32.totalorder %s291_s2, %s525_s0 }
  0x17   : > { %p299_p8 = scmp.lt.s32.totalorder %s297_s11, %s292_s3 }
  0x18   : > { %p295_p4 = pnand %p294_p3, %p293_p2 }
  0x19   : > { %p300_p10 = por %p299_p8, %p298_p5 }
  0x1a   : > { %p296_p7 = pneg %p295_p4 }
  0x1c   : > { %p301_p9 = pnand %p300_p10, %p296_p7 }
  0x1e   : > { %304 = shalt.err (!%p301_p9)
}
  0x1f   : > { %249 = dma.hbm_to_vmem [thread:$0]  (!%p463_p13), %s98_s26, 128, %s100_s28, %s88_s30  }
  0x20   : > { %p105_p2 = pnand %p235_p0, %p104_p1 }
  0x21   : > { %s484_s16 = sand.u32 (!%p105_p2), 1, %s378_s7  }
  0x22   : > { %108 = sbr.rel (%p105_p2) target bundleno = 65 (0x41), region = 24  ;;  %s236_s20 = sshll.u32 (!%p105_p2), %s484_s16, 3 }
  0x23   : > { %s111_s21 = scalar_lea.sflag (!%p105_p2), [#allocation3], %s484_s16  ;;  %s114_s22 = scalar_lea.vmem (!%p105_p2), [#allocation2], %s236_s20 }
  0x27   : > { %365 = dma.done.wait (%p441_p6), %s111_s21, 128  }
  0x28   : > { %367 = vsyncadd (%p441_p6), %s111_s21, 4294967168  ;;  %v134_v0 = vld [vmem:[%s114_s22] sm:$0xff]  ;;  %s239_s23 = sshll.u32 %s419_s10, 3  ;;  %s133_s27 = scalar_lea.vmem [#allocation5], %s236_s20 }
  0x29   : > { %v135_v1 = vmul.f32 %v134_v0, %v134_v0  ;;  %s155_s26 = scalar_lea.hbm %s526_s1, %s239_s23  ;;  %s157_s28 = sshll.u32 %s133_s27, 4  ;;  %s158_s28 = int_to_ptr.vmem [resolvable:$true] %s157_s28 }
  0x2a   : > { %s159_s17 = sshll.u32 %s155_s26, 4  ;;  %s145_s29 = scalar_lea.sflag [#allocation4], %s484_s16  ;;  %s160_s17 = int_to_ptr.hbm [resolvable:$true] %s159_s17 }
  0x2b   : > { %v136_v2 = vmul.f32 0.035677407, %v135_v1  ;;  %s334_s30 = sshra.s32 %s160_s17, 4  ;;  %s340_s4 = scalar_lea.hbm %s526_s1, 16  ;;  %s335_s30 = int_to_ptr.hbm [resolvable:$true] %s334_s30 }
  0x2c   : > { %s336_s2 = scalar_lea.hbm %s335_s30, 8  ;;  %p341_p0 = scmp.lt.s32.totalorder %s335_s30, %s526_s1 }
  0x2d   : > { %v137_v3 = vadd.f32 0.7978846, %v136_v2  ;;  %p337_p6 = scmp.ne.s32.totalorder %s335_s30, %s336_s2  ;;  %p342_p1 = scmp.lt.s32.totalorder %s340_s4, %s336_s2 }
  0x2f   : > { %v138_v4 = vmul.f32 %v137_v3, %v134_v0  ;;  %p338_p9 = pnand %p337_p6, %p448_p11  ;;  %p343_p3 = por %p342_p1, %p341_p0 }
  0x31   : > { %288 = vtanh.f32 %v138_v4  ;;  %p339_p13 = pneg %p338_p9 }
  0x33   : > { %p344_p4 = pnand %p343_p3, %p339_p13 }
  0x37   : > { %v289_v5 = vpop.eup %288 }
  0x38   : > { %v140_v6 = vmul.f32 0.5, %v289_v5 }
  0x3a   : > { %v141_v7 = vadd.f32 0.5, %v140_v6 }
  0x3c   : > { %v142_v8 = vmul.f32 %v141_v7, %v134_v0 }
  0x3e   : > { %143 = vst [vmem:[%s133_s27] sm:$0xff] %v142_v8 }
  0x3f   : > { %347 = shalt.err (!%p344_p4)
}
  0x40   : > { %244 = dma.vmem_to_hbm [thread:$0]  (%p448_p11), %s158_s28, 128, %s160_s17, %s145_s29  }
  0x41 PF: > { %s171_s13 = sand.u32 1, %s374_s6   ;;  %p532_p7 = scmp.ge.s32.totalorder %s386_s9, 2 }
  0x42   : > { %s172_s14 = scalar_lea.sflag [#allocation4], %s171_s13 }
  0x43   : > { %p251_p5 = pnand %p532_p7, %p452_p12 }
  0x45   : > { %p252_p8 = pneg %p251_p5 }
  0x47   : > { %369 = dma.done.wait (%p252_p8), %s172_s14, 128  }
  0x48   : > { %371 = vsyncadd (%p252_p8), %s172_s14, 4294967168  ;;  %p14_p10 = scmp.ge.s32.totalorder %s423_s12, 4   ;;  %s533_s6 = smov %s378_s7 }
  0x49   : > { %s534_s7 = smov %s382_s8  ;;  %s535_s8 = smov %s435_s15 }
  0x4a   : > { %s536_s9 = smov %s423_s12  ;;  %16 = sbr.rel (!%p14_p10) target bundleno = 5 (0x5), region = 69 }
  0x4f   :  { %178 = vsyncpa [#allocation3], 1 }
  0x50   :  { %180 = vsyncpa [#allocation3 + $0x1], 1 }
  0x51   :  { %181 = vsyncpa [#allocation4], 1 }
  0x52   :  { %183 = vsyncpa [#allocation4 + $0x1], 1 }

</bundles_post_ra>
